<compile_context>
chip_gen: v7x
topology: tpu7x:2x2x1
jax: 0.10.0
libtpu: 0.0.40
codegen_flags: <defaults>
</compile_context>

<pallas_src>
import functools

import jax
import jax.numpy as jnp
from jax.experimental import pallas as pl
from jax.experimental.pallas import tpu as pltpu

IN_NC = 3
NC = 1600
NUM_BINS = 25
LEAKY_SLOPE = 0.01  # nn.LeakyReLU() default


def _round_up(x, m):
    return (x + m - 1) // m * m


def _mlp_kernel(x_ref, w1_ref, b1_ref, w2_ref, b2_ref, o_ref, *, ew_bf16):
    # Layer 1: bf16 operands (K = in_nc = 3) on the MXU, f32 accumulation.
    h = jnp.dot(x_ref[...], w1_ref[...], preferred_element_type=jnp.float32)

    if ew_bf16:
        # v6e / v7x: bf16 VPU -> bias + LeakyReLU in bf16 (half the vreg-ops
        # on the (TB, 1664) intermediate, and it is already layer-2's dtype).
        hb = h.astype(jnp.bfloat16) + b1_ref[...].astype(jnp.bfloat16)
        hb = jnp.maximum(hb, hb * jnp.asarray(LEAKY_SLOPE, jnp.bfloat16))
    else:
        # v5e: no bf16 VPU path -> keep the elementwise chain in f32, cast
        # only for the second matmul.
        hf = h + b1_ref[...]
        hf = jnp.maximum(hf, LEAKY_SLOPE * hf)
        hb = hf.astype(jnp.bfloat16)

    # Layer 2 (FLOP-dominant): bf16 operands, f32 accumulation.
    o = jnp.dot(hb, w2_ref[...], preferred_element_type=jnp.float32)
    o_ref[...] = (o + b2_ref[...]).astype(o_ref.dtype)


def nonlinear_bin(inp, w1, b1, w2, b2, *, block_b=2048):
    """Fused NonLinearBin forward.

    inp: (..., in_nc) float32
    w1 : (in_nc, nc)      -- PyTorch `hidden.weight.T`
    b1 : (nc,)
    w2 : (nc, num_bins)   -- PyTorch `out.weight.T`
    b2 : (num_bins,)
    returns (..., num_bins) float32

    Note: both matmuls use bf16 operands with f32 accumulation; expect
    ~1e-2 relative error vs a pure-f32 reference.
    """
    in_nc, nc = w1.shape
    nbins = w2.shape[1]
    lead = inp.shape[:-1]

    try:
        kind = jax.devices()[0].device_kind.lower()
    except Exception:  # pragma: no cover - fall back to sensible defaults
        kind = ""
    is_v5 = "v5" in kind
    is_v7 = "v7" in kind
    ew_bf16 = not is_v5  # bf16 elementwise only where the VPU supports it

    x = inp.reshape(-1, in_nc).astype(jnp.bfloat16)
    B = x.shape[0]

    # Lane-dense padding of the feature dims.  Zero pads are inert: they pass
    # through bias/LeakyReLU as constants in dead columns and contribute 0 to
    # the second matmul (w2 pad rows are zero).
    nc_p = _round_up(nc, 128)        # 1600 -> 1664
    out_p = _round_up(nbins, 128)    # 25   -> 128

    w1p = jnp.zeros((in_nc, nc_p), jnp.bfloat16).at[:, :nc].set(w1.astype(jnp.bfloat16))
    b1p = jnp.zeros((1, nc_p), jnp.float32).at[:, :nc].set(b1.astype(jnp.float32))
    w2p = jnp.zeros((nc_p, out_p), jnp.bfloat16).at[:nc, :nbins].set(w2.astype(jnp.bfloat16))
    b2p = jnp.zeros((1, out_p), jnp.float32).at[:, :nbins].set(b2.astype(jnp.float32))

    # Batch tile: multiple of 8 (protects the (8,128) rule against odd
    # block_b), capped at 2048 so the f32+bf16 intermediates fit v7x VMEM.
    tb = min(_round_up(max(block_b, 8), 8), 2048)
    tb = min(tb, _round_up(max(B, 1), 8))
    # v7x megacore: ensure >= 2 batch tiles when the batch allows, otherwise
    # one TensorCore sits idle.
    if is_v7 and B > 8 and _round_up(B, tb) // tb < 2:
        tb = _round_up(-(-B // 2), 8)
    b_pad = _round_up(max(B, 1), tb)
    if b_pad != B:
        x = jnp.zeros((b_pad, in_nc), jnp.bfloat16).at[:B].set(x)

    grid = (b_pad // tb,)

    flops = 2 * b_pad * (in_nc * nc_p + nc_p * out_p)
    bytes_accessed = (b_pad * in_nc * 2      # x (bf16)
                      + in_nc * nc_p * 2     # w1 (bf16)
                      + nc_p * 4             # b1
                      + nc_p * out_p * 2     # w2 (bf16)
                      + out_p * 4            # b2
                      + b_pad * out_p * 4)   # out (f32)

    out = pl.pallas_call(
        functools.partial(_mlp_kernel, ew_bf16=ew_bf16),
        out_shape=jax.ShapeDtypeStruct((b_pad, out_p), jnp.float32),
        grid=grid,
        in_specs=[
            pl.BlockSpec((tb, in_nc), lambda i: (i, 0)),     # streamed per tile
            pl.BlockSpec((in_nc, nc_p), lambda i: (0, 0)),   # resident weight
            pl.BlockSpec((1, nc_p), lambda i: (0, 0)),       # resident bias
            pl.BlockSpec((nc_p, out_p), lambda i: (0, 0)),   # resident weight
            pl.BlockSpec((1, out_p), lambda i: (0, 0)),      # resident bias
        ],
        out_specs=pl.BlockSpec((tb, out_p), lambda i: (i, 0)),
        compiler_params=pltpu.CompilerParams(
            dimension_semantics=("parallel",),  # shard batch tiles across TCs
            vmem_limit_bytes=40 * 1024 * 1024,  # headroom on v7x's 64 MiB VMEM
        ),
        cost_estimate=pl.CostEstimate(
            flops=flops, transcendentals=0, bytes_accessed=bytes_accessed),
    )(x, w1p, b1p, w2p, b2p)

    return out[:B, :nbins].reshape(*lead, nbins)


def _reference(inp, w1, b1, w2, b2):
    h = inp @ w1 + b1
    h = jnp.where(h > 0, h, LEAKY_SLOPE * h)
    return h @ w2 + b2


if __name__ == "__main__":
    key = jax.random.PRNGKey(0)
    k_x, k_w1, k_b1, k_w2, k_b2 = jax.random.split(key, 5)

    # Deterministic PyTorch-Linear-like uniform init.
    bound1 = 1.0 / (IN_NC ** 0.5)
    w1 = jax.random.uniform(k_w1, (IN_NC, NC), jnp.float32, -bound1, bound1)
    b1 = jax.random.uniform(k_b1, (NC,), jnp.float32, -bound1, bound1)
    bound2 = 1.0 / (NC ** 0.5)
    w2 = jax.random.uniform(k_w2, (NC, NUM_BINS), jnp.float32, -bound2, bound2)
    b2 = jax.random.uniform(k_b2, (NUM_BINS,), jnp.float32, -bound2, bound2)

    # Test 1: tiny batch (single grid tile, batch padded 4 -> 8).
    B = 4
    inp = jax.random.normal(k_x, (B, IN_NC), dtype=jnp.float32)
    out = jax.block_until_ready(nonlinear_bin(inp, w1, b1, w2, b2))
    ref = _reference(inp, w1, b1, w2, b2)
    assert out.shape == (B, NUM_BINS), out.shape
    # bf16 operands in both matmuls (f32 accumulation) -> loose tolerance.
    assert jnp.allclose(out, ref, atol=3e-2, rtol=3e-2), "mismatch vs reference (test 1)"

    # Test 2: ragged batch across multiple grid tiles (exercises tiling + pad path).
    B2 = 20
    inp2 = jax.random.normal(jax.random.PRNGKey(1), (B2, IN_NC), dtype=jnp.float32)
    out2 = jax.block_until_ready(nonlinear_bin(inp2, w1, b1, w2, b2, block_b=8))
    ref2 = _reference(inp2, w1, b1, w2, b2)
    assert out2.shape == (B2, NUM_BINS), out2.shape
    assert jnp.allclose(out2, ref2, atol=3e-2, rtol=3e-2), "mismatch vs reference (test 2)"

    print("KERNEL_OK")
</pallas_src>

<mosaic_0001>
module attributes {stable_mosaic.version = 11 : i64} {
  func.func @_mlp_kernel(%arg0: i32, %arg1: memref<8x3xbf16, #tpu.memory_space<vmem>>, %arg2: memref<3x1664xbf16, #tpu.memory_space<vmem>>, %arg3: memref<1x1664xf32, #tpu.memory_space<vmem>>, %arg4: memref<1664x128xbf16, #tpu.memory_space<vmem>>, %arg5: memref<1x128xf32, #tpu.memory_space<vmem>>, %arg6: memref<8x128xf32, #tpu.memory_space<vmem>>) attributes {dimension_semantics = [#tpu.dimension_semantics<parallel>], iteration_bounds = array<i64: 1>, scalar_prefetch = 0 : i64, scratch_operands = 0 : i64, tpu.core_type = #tpu.core_type<tc>, window_params = [{transform_indices = @transform_0, window_bounds = array<i64: 8, 3>}, {pipeline_mode = #tpu.pipeline_mode<synchronous>, transform_indices = @transform_1, window_bounds = array<i64: 3, 1664>}, {pipeline_mode = #tpu.pipeline_mode<synchronous>, transform_indices = @transform_2, window_bounds = array<i64: 1, 1664>}, {pipeline_mode = #tpu.pipeline_mode<synchronous>, transform_indices = @transform_3, window_bounds = array<i64: 1664, 128>}, {pipeline_mode = #tpu.pipeline_mode<synchronous>, transform_indices = @transform_4, window_bounds = array<i64: 1, 128>}, {transform_indices = @transform_5, window_bounds = array<i64: 8, 128>}]} {
    %c0 = arith.constant 0 : index
    %c0_0 = arith.constant 0 : index
    %0 = vector.load %arg1[%c0, %c0_0] : memref<8x3xbf16, #tpu.memory_space<vmem>>, vector<8x3xbf16>
    %c0_1 = arith.constant 0 : index
    %c0_2 = arith.constant 0 : index
    %1 = vector.load %arg2[%c0_1, %c0_2] : memref<3x1664xbf16, #tpu.memory_space<vmem>>, vector<3x1664xbf16>
    %cst = arith.constant dense<0.000000e+00> : vector<8x1664xf32>
    %2 = tpu.matmul %0, %1, %cst {dimension_numbers = #tpu.dot_dimension_numbers<[1], [0], [0], [1], [0, 0, 1, 1], [], []>} : vector<8x3xbf16>, vector<3x1664xbf16>, vector<8x1664xf32> -> vector<8x1664xf32>
    %3 = arith.truncf %2 : vector<8x1664xf32> to vector<8x1664xbf16>
    %c0_3 = arith.constant 0 : index
    %c0_4 = arith.constant 0 : index
    %4 = vector.load %arg3[%c0_3, %c0_4] : memref<1x1664xf32, #tpu.memory_space<vmem>>, vector<1x1664xf32>
    %5 = arith.truncf %4 : vector<1x1664xf32> to vector<1x1664xbf16>
    %6 = vector.broadcast %5 : vector<1x1664xbf16> to vector<8x1664xbf16>
    %7 = arith.addf %3, %6 : vector<8x1664xbf16>
    %cst_5 = arith.constant 1.000980e-02 : bf16
    %8 = vector.broadcast %cst_5 : bf16 to vector<8x1664xbf16>
    %9 = arith.mulf %7, %8 : vector<8x1664xbf16>
    %10 = arith.maximumf %7, %9 : vector<8x1664xbf16>
    %c0_6 = arith.constant 0 : index
    %c0_7 = arith.constant 0 : index
    %11 = vector.load %arg4[%c0_6, %c0_7] : memref<1664x128xbf16, #tpu.memory_space<vmem>>, vector<1664x128xbf16>
    %cst_8 = arith.constant dense<0.000000e+00> : vector<8x128xf32>
    %12 = tpu.matmul %10, %11, %cst_8 {dimension_numbers = #tpu.dot_dimension_numbers<[1], [0], [0], [1], [0, 0, 1, 1], [], []>} : vector<8x1664xbf16>, vector<1664x128xbf16>, vector<8x128xf32> -> vector<8x128xf32>
    %c0_9 = arith.constant 0 : index
    %c0_10 = arith.constant 0 : index
    %13 = vector.load %arg5[%c0_9, %c0_10] : memref<1x128xf32, #tpu.memory_space<vmem>>, vector<1x128xf32>
    %14 = vector.broadcast %13 : vector<1x128xf32> to vector<8x128xf32>
    %15 = arith.addf %12, %14 : vector<8x128xf32>
    %c0_11 = arith.constant 0 : index
    %c0_12 = arith.constant 0 : index
    %16 = vector.load %arg6[%c0_11, %c0_12] : memref<8x128xf32, #tpu.memory_space<vmem>>, vector<8x128xf32>
    tpu.vector_store %arg6[%c0_11, %c0_12], %15 {strides = array<i32>} : memref<8x128xf32, #tpu.memory_space<vmem>>, vector<8x128xf32>,
    return
  }
  func.func @transform_0(%arg0: i32) -> (i32, i32) {
    %c0_i32 = arith.constant 0 : i32
    %c0_i32_0 = arith.constant 0 : i32
    return %arg0, %c0_i32 : i32, i32
  }
  func.func @transform_1(%arg0: i32) -> (i32, i32) {
    %c0_i32 = arith.constant 0 : i32
    %c0_i32_0 = arith.constant 0 : i32
    %c0_i32_1 = arith.constant 0 : i32
    return %c0_i32, %c0_i32_0 : i32, i32
  }
  func.func @transform_2(%arg0: i32) -> (i32, i32) {
    %c0_i32 = arith.constant 0 : i32
    %c0_i32_0 = arith.constant 0 : i32
    %c0_i32_1 = arith.constant 0 : i32
    return %c0_i32, %c0_i32_0 : i32, i32
  }
  func.func @transform_3(%arg0: i32) -> (i32, i32) {
    %c0_i32 = arith.constant 0 : i32
    %c0_i32_0 = arith.constant 0 : i32
    %c0_i32_1 = arith.constant 0 : i32
    return %c0_i32, %c0_i32_0 : i32, i32
  }
  func.func @transform_4(%arg0: i32) -> (i32, i32) {
    %c0_i32 = arith.constant 0 : i32
    %c0_i32_0 = arith.constant 0 : i32
    %c0_i32_1 = arith.constant 0 : i32
    return %c0_i32, %c0_i32_0 : i32, i32
  }
  func.func @transform_5(%arg0: i32) -> (i32, i32) {
    %c0_i32 = arith.constant 0 : i32
    %c0_i32_0 = arith.constant 0 : i32
    return %arg0, %c0_i32 : i32, i32
  }
}

</mosaic_0001>

<bundles_post_ra>
// kernel: tpu_custom_call.1
= control target key start
LH: loop header
LB: loop body
LE: loop exit
PB: predicated region body
PF: predicated region fallthrough
CT: control target
= control target key end

     0   :  { %10 = vsyncpa [#allocation3], 0  ;;  %s2503_s0 = inlined_call_operand.vmem [shape: bf16[8,3], index: 0, kind: input, shape index: {}]   ;;  %s2504_s1 = inlined_call_operand.hbm [shape: bf16[3,1664], index: 1, kind: input, shape index: {}]   ;;  %s2505_s2 = inlined_call_operand.vmem [shape: f32[1,1664], index: 2, kind: input, shape index: {}]   ;;  %s2506_s3 = inlined_call_operand.hbm [shape: bf16[1664,128], index: 3, kind: input, shape index: {}]   ;;  %s2507_s4 = inlined_call_operand.vmem [shape: f32[1,128], index: 4, kind: input, shape index: {}]   ;;  %s2508_s5 = inlined_call_operand.hbm [shape: f32[8,128], index: 5, kind: output, shape index: {}]  }
   0x1   :  { %11 = vsyncpa [#allocation6], 0 }
   0x2   :  { %12 = vsyncpa [#allocation4], 0  ;;  %s2281_s18 = smov [#allocation2]   ;;  %s2282_s20 = smov [#allocation5]  }
   0x3   :  { %s21_s19 = sshll.u32 %s2281_s18, 4  ;;  %s32_s21 = sshll.u32 %s2282_s20, 4  ;;  %s22_s19 = int_to_ptr.vmem [resolvable:$true] %s21_s19  ;;  %s2321_s21 = int_to_ptr.vmem [resolvable:$true] %s32_s21 }
   0x4   :  { %s2209_s24 = scalar_lea.hbm %s2504_s1, 416 }
   0x5   :  { %p2210_p0 = scmp.ne.s32.totalorder %s2504_s1, %s2209_s24  ;;  %p2213_p1 = scmp.lt.u32.totalorder %s2209_s24, %s2504_s1 }
   0x7   :  { %p2215_p2 = pnand %p2213_p1, %p2210_p0 }
   0x9   :  { %2218 = shalt.err (!%p2215_p2)
}
   0xa   :  { %s2219_s29 = scalar_lea.vmem %s22_s19, 416  ;;  %p2224_p4 = scmp.lt.s32.totalorder %s22_s19, %s22_s19 }
   0xb   :  { %p2220_p3 = scmp.ne.s32.totalorder %s22_s19, %s2219_s29  ;;  %p2225_p5 = scmp.lt.s32.totalorder %s2219_s29, %s2219_s29 }
   0xd   :  { %p2226_p6 = por %p2225_p5, %p2224_p4 }
   0xf   :  { %p2227_p7 = pnand %p2226_p6, %p2220_p3 }
  0x11   :  { %2230 = shalt.err (!%p2227_p7)
}
  0x12   :  { %24 = dma.hbm_to_vmem [thread:$0]  %s2504_s1, 416, %s22_s19, [#allocation3]  }
  0x13   :  { %s2231_s9 = scalar_lea.hbm %s2506_s3, 13312 }
  0x14   :  { %p2232_p8 = scmp.ne.s32.totalorder %s2506_s3, %s2231_s9  ;;  %p2235_p9 = scmp.lt.u32.totalorder %s2231_s9, %s2506_s3 }
  0x16   :  { %p2237_p10 = pnand %p2235_p9, %p2232_p8 }
  0x18   :  { %2240 = shalt.err (!%p2237_p10)
}
  0x19   :  { %s2241_s14 = scalar_lea.vmem %s2321_s21, 13312  ;;  %p2246_p12 = scmp.lt.s32.totalorder %s2321_s21, %s2321_s21 }
  0x1a   :  { %p2242_p11 = scmp.ne.s32.totalorder %s2321_s21, %s2241_s14  ;;  %p2247_p13 = scmp.lt.s32.totalorder %s2241_s14, %s2241_s14 }
  0x1c   :  { %p2248_p0 = por %p2247_p13, %p2246_p12 }
  0x1e   :  { %p2249_p1 = pnand %p2248_p0, %p2242_p11 }
  0x20   :  { %2252 = shalt.err (!%p2249_p1)
}
  0x21   :  { %s2283_s1 = smov 64   ;;  %s2284_s15 = smov 4  }
  0x22   :  { %38 = dma.hbm_to_vmem [thread:$0]  %s2506_s3, 13312, %s2321_s21, [#allocation6], %s2283_s1, %s2283_s1, %s2284_s15  }
  0x23   :  { %2275 = dma.done.wait [#allocation3], 416  }
  0x24   :  { %2276 = vsyncadd [#allocation3], 4294966880 }
  0x25   :  { %2277 = dma.done.wait [#allocation6], 13312  }
  0x26   :  { %2278 = vsyncadd [#allocation6], 4294953984  ;;  %v62_v0 = vlaneseq  ;;  %v2285_v1 = vmov 1983009808   ;;  %vm120_vm0 = vcmask 1040384   ;;  %v2286_v4 = vmov 0  }
  0x27   :  { %v60_v2 = vunpack.c.l.s4 %v2285_v1  ;;  %195 = vmatprep.mubr.bf16.mxu0 %v2286_v4  ;;  %318 = vmatprep.mubr.bf16.mxu1 %v2286_v4  ;;  %vm121_vm1 = vcmask 1041408   ;;  %v2287_v6 = vmov 65535   ;;  %v50_v9 = vld [vmem:[#allocation2] sm:$0xff]  ;;  %v51_v11 = vld [vmem:[#allocation2 + $0x8] sm:$0xff]  ;;  %v52_v16 = vld [vmem:[#allocation2 + $0x10] sm:$0xff]  ;;  %vm116_vm2 = vcmask 23552  }
  0x28   :  { %v2352_v3 = vshrl.u32 %v62_v0, 7  ;;  %v122_v7 = vsel %vm120_vm0, 4294967295, %v2287_v6  ;;  %v58_v12 = vcombine.high %v50_v9, %v50_v9  ;;  %v75_v15 = vcombine.high %v51_v11, %v51_v11  ;;  %v2366_v29 = vld [vmem:[%s2503_s0] sm:$0xf]  ;;  %v2105_v37 = vld [vmem:[#allocation5 + $0x40] sm:$0xff]   ;;  %v2107_v42 = vld [vmem:[#allocation5 + $0x48] sm:$0xff]  }
  0x29   :  { %v61_v5 = vunpack.c.0.s8 %v60_v2  ;;  %v2357_v10 = vsel %vm121_vm1, %v122_v7, 0  ;;  %v92_v17 = vcombine.high %v52_v16, %v52_v16  ;;  %v2106_v41 = vld [vmem:[#allocation5] sm:$0xff]   ;;  %v2108_v43 = vld [vmem:[#allocation5 + $0x8] sm:$0xff]   ;;  %v2109_v44 = vld [vmem:[#allocation5 + $0x50] sm:$0xff]   ;;  %v2288_v49 = vmov 0.0  }
  0x2a   :  { %v2111_v46 = vld [vmem:[#allocation5 + $0x10] sm:$0xff]   ;;  %v2113_v47 = vld [vmem:[#allocation5 + $0x58] sm:$0xff]   ;;  %v2110_v51 = vld [vmem:[#allocation5 + $0xc0] sm:$0xff]   ;;  %vm2289_vm3 = vmmov 0  }
  0x2b   :  { %v64_v8 = vsub.s32 %v61_v5, %v2352_v3  ;;  %v1810_v48 = vld.sshfl [vmem:[#allocation2 + $0x18] sm:$0x3 pattern:$0x76325410]  ;;  %v2117_v52 = vld [vmem:[#allocation5 + $0x60] sm:$0xff]   ;;  %v2121_v55 = vld [vmem:[#allocation5 + $0x68] sm:$0xff]  }
  0x2c   :  { %v2115_v50 = vld [vmem:[#allocation5 + $0x18] sm:$0xff]   ;;  %v161_v53 = vand.u32 %v1810_v48, %v2357_v10  ;;  %v2119_v54 = vld [vmem:[#allocation5 + $0x20] sm:$0xff]   ;;  %v2123_v56 = vld [vmem:[#allocation5 + $0x28] sm:$0xff]  }
  0x2d   :  { %v65_v13 = vrot.slane %v50_v9, %v64_v8  ;;  %v82_v14 = vrot.slane %v51_v11, %v64_v8  ;;  %v72_v19 = vrot.slane %v58_v12, %v64_v8  ;;  %v89_v21 = vrot.slane %v75_v15, %v64_v8  ;;  %v2112_v57 = vld [vmem:[#allocation5 + $0x80] sm:$0xff]   ;;  %v2114_v58 = vld [vmem:[#allocation5 + $0xc8] sm:$0xff]   ;;  %v2118_v60 = vld [vmem:[#allocation5 + $0xd0] sm:$0xff]  }
  0x2e   :  { %v106_v26 = vrot.slane %v92_v17, %v64_v8  ;;  %v99_v34 = vrot.slane %v52_v16, %v64_v8  ;;  %v2116_v59 = vld [vmem:[#allocation5 + $0x88] sm:$0xff]   ;;  %v2120_v61 = vld [vmem:[#allocation5 + $0x90] sm:$0xff]   ;;  %v2122_v62 = vld [vmem:[#allocation5 + $0xd8] sm:$0xff]   ;;  %v2399_v15 = vsub.s32 0, %v2352_v3  ;;  %v472_v17 = vsub.s32 1, %v2352_v3 }
  0x2f   :  { %v73_v18 = vcombine.high %v65_v13, %v65_v13  ;;  %v125_v20 = vand.u32 %v2357_v10, %v65_v13  ;;  %v74_v23 = vcombine.high %v72_v19, %v72_v19  ;;  %v90_v24 = vcombine.high %v82_v14, %v82_v14  ;;  %v2124_v63 = vld [vmem:[#allocation5 + $0x98] sm:$0xff]   ;;  %v2125_v0 = vld [vmem:[#allocation5 + $0x70] sm:$0xff]   ;;  %v2126_v1 = vld [vmem:[#allocation5 + $0xe0] sm:$0xff]  }
  0x30   :  { %v91_v25 = vcombine.high %v89_v21, %v89_v21  ;;  %v143_v28 = vand.u32 %v2357_v10, %v89_v21  ;;  %v131_v30 = vand.u32 %v2357_v10, %v72_v19  ;;  %v108_v32 = vcombine.high %v106_v26, %v106_v26  ;;  %v2127_v2 = vld [vmem:[#allocation5 + $0x30] sm:$0xff]   ;;  %v2129_v5 = vld [vmem:[#allocation5 + $0x78] sm:$0xff]   ;;  %v2130_v6 = vld [vmem:[#allocation5 + $0xe8] sm:$0xff]  }
  0x31   :  { %v128_v22 = vand.u32 %v2357_v10, %v73_v18  ;;  %v134_v27 = vand.u32 %v2357_v10, %v74_v23  ;;  %v140_v33 = vand.u32 %v2357_v10, %v90_v24  ;;  %v155_v36 = vand.u32 %v2357_v10, %v106_v26  ;;  %v2131_v7 = vld [vmem:[#allocation5 + $0x38] sm:$0xff]   ;;  %v2132_v8 = vld [vmem:[#allocation5 + $0xa8] sm:$0xff]   ;;  %v2133_v9 = vld [vmem:[#allocation5 + $0xf0] sm:$0xff]  }
  0x32   :  { %v146_v31 = vand.u32 %v2357_v10, %v91_v25  ;;  %v158_v35 = vand.u32 %v2357_v10, %v108_v32  ;;  %v107_v38 = vcombine.high %v99_v34, %v99_v34  ;;  %v137_v39 = vand.u32 %v2357_v10, %v82_v14  ;;  %v2135_v11 = vld [vmem:[#allocation5 + $0xb0] sm:$0xff]   ;;  %v2137_v12 = vld [vmem:[#allocation5 + $0xf8] sm:$0xff]   ;;  %v2142_v14 = vld [vmem:[#allocation5 + $0x1c0] sm:$0xff]  }
  0x33   :  { %163 = vmatprep.subr.bf16.mxu0 %v128_v22  ;;  %v149_v45 = vand.u32 %v2357_v10, %v99_v34  ;;  %v2139_v13 = vld [vmem:[#allocation5 + $0xb8] sm:$0xff]   ;;  %v476_v22 = vsub.s32 2, %v2352_v3  ;;  %v480_v24 = vsub.s32 3, %v2352_v3 }
  0x34   :  { %164 = vmatpush1.bf16.msra.mxu0 %v125_v20  ;;  %286 = vmatprep.subr.bf16.mxu1 %v146_v31  ;;  %v152_v40 = vand.u32 %v2357_v10, %v107_v38  ;;  %v2134_v10 = vld [vmem:[#allocation5 + $0x140] sm:$0xff]   ;;  %v2404_v16 = vld [vmem:[%s2505_s2] sm:$0xff]  ;;  %v496_v20 = vsub.s32 7, %v2352_v3  ;;  %v488_v38 = vsub.s32 5, %v2352_v3 }
  0x35   :  { %204 = vmatprep.subr.bf16.mxu0 %v134_v27  ;;  %287 = vmatpush1.bf16.msra.mxu1 %v143_v28  ;;  %v469_v18 = vrot.slane %v2404_v16, %v2399_v15  ;;  %v473_v19 = vrot.slane %v2404_v16, %v472_v17  ;;  %v477_v27 = vrot.slane %v2404_v16, %v476_v22 }
  0x36   :  { %368 = vmatprep.subr.bf16.mxu1 %v158_v35  ;;  %v497_v25 = vrot.slane %v2404_v16, %v496_v20 }
  0x37   :  { %1811 = vmatmul.mubr.msk.bf16.vlgmr.msra.gmra.mrb[0].mxu0 %vm116_vm2, %v2366_v29  ;;  %v531_v21 = vpack.c.bf16 %v469_v18, %v469_v18  ;;  %v532_v23 = vpack.c.bf16 %v473_v19, %v473_v19  ;;  %v533_v34 = vpack.c.bf16 %v477_v27, %v477_v27  ;;  %v2140_v19 = vld [vmem:[#allocation5 + $0x108] sm:$0xff]  }
  0x38   :  { %205 = vmatpush1.bf16.msra.mxu0 %v131_v30  ;;  %236 = vmatprep.mubr.bf16.mxu0 %v2286_v4  ;;  %v2423_v30 = vld [vmem:[%s2505_s2 + $0x8] sm:$0x1f]  ;;  %v538_v31 = vpack.c.bf16 %v497_v25, %v497_v25  ;;  %v2141_v25 = vld [vmem:[#allocation5 + $0x150] sm:$0xff]  }
  0x39   :  { %245 = vmatprep.subr.bf16.mxu0 %v140_v33  ;;  %1814 = vmatmul.mubr.msk.bf16.vlgmr.msra.gmra.mrb[0].mxu1 %vm116_vm2, %v2366_v29  ;;  %v545_v26 = vpack.i.b16 %v531_v21, %v531_v21  ;;  %v552_v28 = vpack.i.b16 %v532_v23, %v532_v23  ;;  %v509_v32 = vrot.slane %v2423_v30, %v476_v22 }
  0x3a   :  { %369 = vmatpush1.bf16.msra.mxu1 %v155_v36  ;;  %400 = vmatprep.mubr.bf16.mxu1 %v2286_v4 }
  0x3b   :  { %1925 = vmatprep.subr.bf16.mxu1 %v2105_v37  ;;  %v550_v33 = vrot.slane %v545_v26, %v2399_v15  ;;  %v557_v36 = vrot.slane %v552_v28, %v2399_v15  ;;  %v484_v26 = vsub.s32 4, %v2352_v3 }
  0x3f   :  { %1812 = vmatmul.mubr.msk.bf16.vlgmr.msra.gmra.mrb[4].mxu0 %vm116_vm2, %v2366_v29 }
  0x40   :  { %246 = vmatpush1.bf16.msra.mxu0 %v137_v39  ;;  %277 = vmatprep.mubr.bf16.mxu0 %v2286_v4 }
  0x41   :  { %327 = vmatprep.subr.bf16.mxu0 %v152_v40  ;;  %1816 = vmatmul.mubr.msk.bf16.vlgmr.msra.gmra.mrb[4].mxu1 %vm116_vm2, %v2366_v29 }
  0x42   :  { %1926 = vmatpush3.bf16.msra.mxu1 %v2106_v41 }
  0x43   :  { %1927 = vmatprep.subr.bf16.mxu1 %v2107_v42 }
  0x46   :  { %1928 = vmatpush3.bf16.msra.mxu1 %v2108_v43  ;;  %v594_v43 = vpack.i.b16 %v538_v31, %v538_v31 }
  0x47   :  { %1813 = vmatmul.mubr.msk.bf16.vlgmr.msra.gmra.mrb[8].mxu0 %vm116_vm2, %v2366_v29  ;;  %1929 = vmatprep.subr.bf16.mxu1 %v2109_v44  ;;  %v541_v44 = vpack.c.bf16 %v509_v32, %v509_v32 }
  0x48   :  { %328 = vmatpush1.bf16.msra.mxu0 %v149_v45  ;;  %359 = vmatprep.mubr.bf16.mxu0 %v2286_v4  ;;  %v2128_v4 = vld [vmem:[#allocation5 + $0xa0] sm:$0xff]  }
  0x49   :  { %2066 = vmatprep.subr.bf16.mxu0 %v2288_v49 }
  0x4a   :  { %1930 = vmatpush3.bf16.msra.mxu1 %v2111_v46 }
  0x4b   :  { %1931 = vmatprep.subr.bf16.mxu1 %v2113_v47  ;;  %v559_v47 = vpack.i.b16 %v533_v34, %v533_v34 }
  0x4e   :  { %1932 = vmatpush3.bf16.msra.mxu1 %v2115_v50 }
  0x4f   :  { %1815 = vmatmul.mubr.msk.bf16.vlgmr.msra.gmra.mrb[12].mxu0 %vm116_vm2, %v2366_v29  ;;  %1933 = vmatprep.subr.bf16.mxu1 %v2117_v52  ;;  %v489_v52 = vrot.slane %v2404_v16, %v488_v38 }
  0x50   :  { %2067 = vmatpush3.bf16.msra.mxu0 %v161_v53  ;;  %2068 = vmatprep.mubr.msk.bf16.mxu0 %vm2289_vm3, %v2288_v49 }
  0x51   :  { %1947 = vmatprep.subr.bf16.mxu0 %v2110_v51 }
  0x52   :  { %1934 = vmatpush3.bf16.msra.mxu1 %v2119_v54 }
  0x53   :  { %1935 = vmatprep.subr.bf16.mxu1 %v2121_v55 }
  0x56   :  { %1936 = vmatpush3.bf16.msra.mxu1 %v2123_v56 }
  0x57   :  { %2069 = vmatmul.mubr.msk.bf16.vlgmr.msra.gmra.mrb[16].mxu0 %vm116_vm2, %v2366_v29  ;;  %1937 = vmatprep.subr.bf16.mxu1 %v2125_v0  ;;  %v481_v29 = vrot.slane %v2404_v16, %v480_v24 }
  0x58   :  { %1948 = vmatpush3.bf16.msra.mxu0 %v2112_v57 }
  0x59   :  { %1949 = vmatprep.subr.bf16.mxu0 %v2114_v58  ;;  %v534_v37 = vpack.c.bf16 %v481_v29, %v481_v29  ;;  %v599_v58 = vrot.slane %v594_v43, %v2399_v15 }
  0x5a   :  { %1938 = vmatpush3.bf16.msra.mxu1 %v2127_v2  ;;  %v536_v2 = vpack.c.bf16 %v489_v52, %v489_v52  ;;  %v2147_v52 = vld [vmem:[#allocation5 + $0x118] sm:$0xff]  }
  0x5b   :  { %1939 = vmatprep.subr.bf16.mxu1 %v2129_v5  ;;  %v566_v51 = vpack.i.b16 %v534_v37, %v534_v37 }
  0x5c   :  { %1950 = vmatpush3.bf16.msra.mxu0 %v2116_v59  ;;  %v580_v20 = vpack.i.b16 %v536_v2, %v536_v2  ;;  %v2153_v2 = vld [vmem:[#allocation5 + $0x168] sm:$0xff]  }
  0x5d   :  { %1951 = vmatprep.subr.bf16.mxu0 %v2118_v60  ;;  %v615_v60 = vpack.i.b16 %v541_v44, %v541_v44 }
  0x5e   :  { %1940 = vmatpush3.bf16.msra.mxu1 %v2131_v7  ;;  %v2138_v7 = vld [vmem:[#allocation5 + $0x148] sm:$0xff]   ;;  %v585_v38 = vrot.slane %v580_v20, %v2399_v15 }
  0x5f   :  { %1969 = vmatprep.subr.bf16.mxu1 %v2134_v10 }
  0x60   :  { %1952 = vmatpush3.bf16.msra.mxu0 %v2120_v61  ;;  %v564_v61 = vrot.slane %v559_v47, %v2399_v15 }
  0x61   :  { %1953 = vmatprep.subr.bf16.mxu0 %v2122_v62 }
  0x64   :  { %1954 = vmatpush3.bf16.msra.mxu0 %v2124_v63  ;;  %v571_v63 = vrot.slane %v566_v51, %v2399_v15  ;;  %v517_v51 = vrot.slane %v2423_v30, %v484_v26 }
  0x65   :  { %1955 = vmatprep.subr.bf16.mxu0 %v2126_v1  ;;  %v2136_v1 = vld [vmem:[#allocation5 + $0x100] sm:$0xff]  }
  0x68   :  { %1956 = vmatpush3.bf16.msra.mxu0 %v2128_v4 }
  0x69   :  { %1957 = vmatprep.subr.bf16.mxu0 %v2130_v6 }
  0x6c   :  { %1958 = vmatpush3.bf16.msra.mxu0 %v2132_v8 }
  0x6d   :  { %1959 = vmatprep.subr.bf16.mxu0 %v2133_v9 }
  0x70   :  { %1960 = vmatpush3.bf16.msra.mxu0 %v2135_v11  ;;  %v620_v11 = vrot.slane %v615_v60, %v2399_v15  ;;  %v543_v60 = vpack.c.bf16 %v517_v51, %v517_v51 }
  0x71   :  { %1961 = vmatprep.subr.bf16.mxu0 %v2137_v12 }
  0x74   :  { %1962 = vmatpush3.bf16.msra.mxu0 %v2139_v13 }
  0x75   :  { %1991 = vmatprep.subr.bf16.mxu0 %v2142_v14 }
 0x10a   :  { %v197_v35 = vpop.f32.mrb[0].mxu0 }
 0x10b   :  { %v449_v39 = vpack.c.bf16 %v197_v35, %v197_v35  ;;  %v199_v40 = vpop.f32.mrb[1].mxu0  ;;  %v2143_v35 = vld [vmem:[#allocation5 + $0x110] sm:$0xff]  }
 0x10c   :  { %v450_v41 = vpack.c.bf16 %v199_v40, %v199_v40  ;;  %v201_v42 = vpop.f32.mrb[2].mxu0  ;;  %v2429_v48 = vpop.f32.mrb[0].mxu1  ;;  %v2146_v40 = vld [vmem:[#allocation5 + $0x1c8] sm:$0xff]  }
 0x10d   :  { %v635_v45 = vadd.bf16 %v550_v33, %v449_v39  ;;  %v202_v46 = vpop.f32.mrb[3].mxu0  ;;  %v322_v53 = vpop.f32.mrb[1].mxu1  ;;  %v2145_v39 = vld [vmem:[#allocation5 + $0x158] sm:$0xff]  }
 0x10e   :  { %v636_v50 = vadd.bf16 %v557_v36, %v450_v41  ;;  %v324_v55 = vpop.f32.mrb[2].mxu1  ;;  %v456_v57 = vpack.c.bf16 %v322_v53, %v322_v53  ;;  %v2144_v36 = vld [vmem:[#allocation5 + $0x180] sm:$0xff]   ;;  %v485_v41 = vrot.slane %v2404_v16, %v484_v26  ;;  %v505_v46 = vrot.slane %v2423_v30, %v472_v17  ;;  %v2148_v53 = vld [vmem:[#allocation5 + $0x188] sm:$0xff]  }
 0x10f   :  { %v648_v54 = vmul.bf16 1009007652, %v635_v45  ;;  %v325_v59 = vpop.f32.mrb[3].mxu1  ;;  %v2149_v55 = vld [vmem:[#allocation5 + $0x160] sm:$0xff]  }
 0x110   :  { %v649_v56 = vmul.bf16 1009007652, %v636_v50  ;;  %v642_v10 = vadd.bf16 %v599_v58, %v456_v57  ;;  %v535_v57 = vpack.c.bf16 %v485_v41, %v485_v41  ;;  %v540_v59 = vpack.c.bf16 %v505_v46, %v505_v46  ;;  %v2160_v26 = vld [vmem:[#allocation5 + $0x1a0] sm:$0xff]  }
 0x111   :  { %v661_v4 = vmax.bf16 %v648_v54, %v635_v45  ;;  %v2166_v46 = vld [vmem:[#allocation5 + $0x240] sm:$0xff]  }
 0x112   :  { %v238_v62 = vpop.f32.mrb[4].mxu0  ;;  %v662_v0 = vmax.bf16 %v649_v56, %v636_v50  ;;  %v655_v29 = vmul.bf16 1009007652, %v642_v10  ;;  %v492_v50 = vsub.s32 6, %v2352_v3  ;;  %v2150_v56 = vld [vmem:[#allocation5 + $0x1d0] sm:$0xff]  }
 0x113   :  { %v451_v5 = vpack.c.bf16 %v238_v62, %v238_v62  ;;  %v240_v6 = vpop.f32.mrb[5].mxu0  ;;  %v2152_v62 = vld [vmem:[#allocation5 + $0x190] sm:$0xff]  }
 0x114   :  { %v452_v8 = vpack.c.bf16 %v240_v6, %v240_v6  ;;  %1545 = vmatprep.mubr.bf16.mxu1 %v662_v0  ;;  %v242_v9 = vpop.f32.mrb[6].mxu0  ;;  %v402_v14 = vpop.f32.mrb[4].mxu1  ;;  %v668_v45 = vmax.bf16 %v655_v29, %v642_v10  ;;  %v493_v17 = vrot.slane %v2404_v16, %v492_v50  ;;  %v608_v6 = vpack.i.b16 %v540_v59, %v540_v59  ;;  %v2161_v29 = vld [vmem:[#allocation5 + $0x178] sm:$0xff]  }
 0x115   :  { %v637_v12 = vadd.bf16 %v564_v61, %v451_v5  ;;  %1546 = vmatmul.mubr.bf16.vlgmr.msra.gmra.mrb[8].mxu1 %v661_v4  ;;  %v243_v13 = vpop.f32.mrb[7].mxu0  ;;  %v459_v21 = vpack.c.bf16 %v402_v14, %v402_v14  ;;  %v2436_v22 = vpop.f32.mrb[5].mxu1  ;;  %v2151_v61 = vld [vmem:[#allocation5 + $0x120] sm:$0xff]   ;;  %v2154_v4 = vld [vmem:[#allocation5 + $0x1d8] sm:$0xff]   ;;  %v513_v16 = vrot.slane %v2423_v30, %v480_v24  ;;  %v629_v10 = vpack.i.b16 %v543_v60, %v543_v60  ;;  %v2173_v60 = vld [vmem:[#allocation5 + $0x250] sm:$0xff]  }
 0x116   :  { %v638_v18 = vadd.bf16 %v571_v63, %v452_v8  ;;  %1970 = vmatpush3.bf16.msra.mxu1 %v2136_v1  ;;  %v406_v27 = vpop.f32.mrb[6].mxu1  ;;  %v573_v1 = vpack.i.b16 %v535_v57, %v535_v57  ;;  %v537_v8 = vpack.c.bf16 %v493_v17, %v493_v17  ;;  %v613_v3 = vrot.slane %v608_v6, %v2399_v15  ;;  %v2171_v17 = vld [vmem:[#allocation5 + $0x1b8] sm:$0xff]  }
 0x117   :  { %v650_v23 = vmul.bf16 1009007652, %v637_v12  ;;  %1971 = vmatprep.subr.bf16.mxu1 %v2138_v7  ;;  %v2439_v31 = vadd.bf16 %v620_v11, %v459_v21  ;;  %v407_v32 = vpop.f32.mrb[7].mxu1  ;;  %v2155_v11 = vld [vmem:[#allocation5 + $0x128] sm:$0xff]   ;;  %v542_v24 = vpack.c.bf16 %v513_v16, %v513_v16  ;;  %v460_v50 = vpack.c.bf16 %v2436_v22, %v2436_v22  ;;  %v2179_v16 = vld [vmem:[#allocation5 + $0x218] sm:$0xff]  }
 0x118   :  { %v651_v28 = vmul.bf16 1009007652, %v638_v18  ;;  %v578_v14 = vrot.slane %v573_v1, %v2399_v15  ;;  %v587_v21 = vpack.i.b16 %v537_v8, %v537_v8  ;;  %v2162_v32 = vld [vmem:[#allocation5 + $0x1e8] sm:$0xff]   ;;  %v2175_v1 = vld [vmem:[#allocation5 + $0x210] sm:$0xff]   ;;  %v501_v6 = vrot.slane %v2423_v30, %v2399_v15 }
 0x119   :  { %v663_v33 = vmax.bf16 %v650_v23, %v637_v12  ;;  %v2156_v12 = vld [vmem:[#allocation5 + $0x198] sm:$0xff]   ;;  %v634_v23 = vrot.slane %v629_v10, %v2399_v15  ;;  %v2172_v22 = vld [vmem:[#allocation5 + $0x208] sm:$0xff]   ;;  %v2182_v10 = vld [vmem:[#allocation5 + $0x2d0] sm:$0xff]  }
 0x11a   :  { %1972 = vmatpush3.bf16.msra.mxu1 %v2140_v19  ;;  %v664_v34 = vmax.bf16 %v651_v28, %v638_v18  ;;  %v2441_v37 = vpop.f32.mrb[8].mxu0  ;;  %v2157_v18 = vld [vmem:[#allocation5 + $0x170] sm:$0xff]   ;;  %v2158_v19 = vld [vmem:[#allocation5 + $0x1e0] sm:$0xff]   ;;  %v2180_v8 = vld [vmem:[#allocation5 + $0x288] sm:$0xff]  }
 0x11b   :  { %1973 = vmatprep.subr.bf16.mxu1 %v2141_v25  ;;  %v281_v42 = vpop.f32.mrb[9].mxu0  ;;  %v453_v13 = vpack.c.bf16 %v2441_v37, %v2441_v37  ;;  %v2159_v25 = vld [vmem:[#allocation5 + $0x130] sm:$0xff]   ;;  %v2185_v30 = vld [vmem:[#allocation5 + $0x268] sm:$0xff]  }
 0x11c   :  { %1585 = vmatprep.mubr.bf16.mxu0 %v664_v34  ;;  %v454_v43 = vpack.c.bf16 %v281_v42, %v281_v42  ;;  %v283_v44 = vpop.f32.mrb[10].mxu0  ;;  %v2163_v42 = vld [vmem:[#allocation5 + $0x138] sm:$0xff]  }
 0x11d   :  { %1586 = vmatmul.mubr.bf16.vlgmr.msra.gmra.mrb[20].mxu0 %v663_v33  ;;  %v284_v47 = vpop.f32.mrb[11].mxu0  ;;  %v639_v28 = vadd.bf16 %v578_v14, %v453_v13  ;;  %v2184_v13 = vld [vmem:[#allocation5 + $0x290] sm:$0xff]  }
 0x11e   :  { %1974 = vmatpush3.bf16.msra.mxu1 %v2143_v35  ;;  %1992 = vmatpush3.bf16.msra.mxu0 %v2144_v36  ;;  %v640_v54 = vadd.bf16 %v585_v38, %v454_v43  ;;  %v622_v36 = vpack.i.b16 %v542_v24, %v542_v24  ;;  %v455_v38 = vpack.c.bf16 %v2429_v48, %v2429_v48  ;;  %v2164_v43 = vld [vmem:[#allocation5 + $0x1a8] sm:$0xff]  }
 0x11f   :  { %1975 = vmatprep.subr.bf16.mxu1 %v2145_v39  ;;  %1993 = vmatprep.subr.bf16.mxu0 %v2146_v40  ;;  %v592_v39 = vrot.slane %v587_v21, %v2399_v15  ;;  %v652_v44 = vmul.bf16 1009007652, %v639_v28  ;;  %v2189_v21 = vld [vmem:[#allocation5 + $0x270] sm:$0xff]  }
 0x120   :  { %v653_v58 = vmul.bf16 1009007652, %v640_v54  ;;  %1665 = vmatprep.mubr.bf16.mxu0 %v668_v45  ;;  %v2165_v45 = vld [vmem:[#allocation5 + $0x1f0] sm:$0xff]   ;;  %v627_v48 = vrot.slane %v622_v36, %v2399_v15 }
 0x121   :  { %v641_v51 = vadd.bf16 %v592_v39, %v455_v38  ;;  %v658_v38 = vmul.bf16 1009007652, %v2439_v31  ;;  %v2201_v39 = vld [vmem:[#allocation5 + $0x2b8] sm:$0xff]  }
 0x122   :  { %1976 = vmatpush3.bf16.msra.mxu1 %v2147_v52  ;;  %1994 = vmatpush3.bf16.msra.mxu0 %v2148_v53  ;;  %v666_v63 = vmax.bf16 %v653_v58, %v640_v54  ;;  %v2451_v0 = vpop.f32.mrb[12].mxu0  ;;  %v2167_v52 = vld [vmem:[#allocation5 + $0x1b0] sm:$0xff]   ;;  %v2168_v53 = vld [vmem:[#allocation5 + $0x200] sm:$0xff]   ;;  %v665_v54 = vmax.bf16 %v652_v44, %v639_v28  ;;  %v646_v58 = vadd.bf16 %v627_v48, %v460_v50  ;;  %v2193_v28 = vld [vmem:[#allocation5 + $0x278] sm:$0xff]  }
 0x123   :  { %1977 = vmatprep.subr.bf16.mxu1 %v2149_v55  ;;  %1995 = vmatprep.subr.bf16.mxu0 %v2150_v56  ;;  %v363_v5 = vpop.f32.mrb[13].mxu0  ;;  %v2169_v55 = vld [vmem:[#allocation5 + $0x1f8] sm:$0xff]   ;;  %v2170_v56 = vld [vmem:[#allocation5 + $0x248] sm:$0xff]   ;;  %v654_v59 = vmul.bf16 1009007652, %v641_v51 }
 0x124   :  { %1625 = vmatprep.mubr.bf16.mxu1 %v666_v63  ;;  %v365_v7 = vpop.f32.mrb[14].mxu0  ;;  %v458_v20 = vpack.c.bf16 %v363_v5, %v363_v5  ;;  %v2178_v5 = vld [vmem:[#allocation5 + $0x2c8] sm:$0xff]   ;;  %v2204_v44 = vld [vmem:[#allocation5 + $0x318] sm:$0xff]  }
 0x125   :  { %v366_v9 = vpop.f32.mrb[15].mxu0  ;;  %v667_v63 = vmax.bf16 %v654_v59, %v641_v51 }
 0x126   :  { %1978 = vmatpush3.bf16.msra.mxu1 %v2151_v61  ;;  %1996 = vmatpush3.bf16.msra.mxu0 %v2152_v62  ;;  %v644_v35 = vadd.bf16 %v613_v3, %v458_v20  ;;  %v2174_v61 = vld [vmem:[#allocation5 + $0x2c0] sm:$0xff]   ;;  %v659_v62 = vmul.bf16 1009007652, %v646_v58  ;;  %v2188_v20 = vld [vmem:[#allocation5 + $0x298] sm:$0xff]   ;;  %v457_v3 = vpack.c.bf16 %v2451_v0, %v2451_v0 }
 0x127   :  { %1979 = vmatprep.subr.bf16.mxu1 %v2153_v2  ;;  %1997 = vmatprep.subr.bf16.mxu0 %v2154_v4  ;;  %v2176_v2 = vld [vmem:[#allocation5 + $0x280] sm:$0xff]   ;;  %v2177_v4 = vld [vmem:[#allocation5 + $0x258] sm:$0xff]  }
 0x128   :  { %v657_v47 = vmul.bf16 1009007652, %v644_v35  ;;  %v672_v7 = vmax.bf16 %v659_v62, %v646_v58  ;;  %v2181_v9 = vld [vmem:[#allocation5 + $0x260] sm:$0xff]  }
 0x12a   :  { %1980 = vmatpush3.bf16.msra.mxu1 %v2155_v11  ;;  %1998 = vmatpush3.bf16.msra.mxu0 %v2156_v12  ;;  %v443_v27 = vpop.f32.mrb[16].mxu0  ;;  %v670_v57 = vmax.bf16 %v657_v47, %v644_v35  ;;  %v539_v11 = vpack.c.bf16 %v501_v6, %v501_v6  ;;  %v2183_v12 = vld [vmem:[#allocation5 + $0x220] sm:$0xff]   ;;  %v2208_v47 = vld [vmem:[#allocation5 + $0x338] sm:$0xff]  }
 0x12b   :  { %1981 = vmatprep.subr.bf16.mxu1 %v2157_v18  ;;  %1999 = vmatprep.subr.bf16.mxu0 %v2158_v19  ;;  %v461_v33 = vpack.c.bf16 %v443_v27, %v443_v27  ;;  %v2070_v34 = vpop.f32.mrb[17].mxu0  ;;  %v2186_v18 = vld [vmem:[#allocation5 + $0x2d8] sm:$0xff]   ;;  %v2187_v19 = vld [vmem:[#allocation5 + $0x228] sm:$0xff]   ;;  %v2199_v35 = vld [vmem:[#allocation5 + $0x300] sm:$0xff]  }
 0x12c   :  { %v446_v37 = vpop.f32.mrb[18].mxu0  ;;  %v601_v14 = vpack.i.b16 %v539_v11, %v539_v11  ;;  %v2198_v34 = vld [vmem:[#allocation5 + $0x2b0] sm:$0xff]  }
 0x12d   :  { %v2464_v40 = vadd.bf16 %v634_v23, %v461_v33  ;;  %v2071_v41 = vpop.f32.mrb[19].mxu0  ;;  %v2190_v23 = vld [vmem:[#allocation5 + $0x2e0] sm:$0xff]   ;;  %v2196_v33 = vld [vmem:[#allocation5 + $0x2a8] sm:$0xff]   ;;  %v2200_v37 = vld [vmem:[#allocation5 + $0x2f8] sm:$0xff]  }
 0x12e   :  { %1982 = vmatpush3.bf16.msra.mxu1 %v2159_v25  ;;  %2000 = vmatpush3.bf16.msra.mxu0 %v2160_v26  ;;  %v606_v24 = vrot.slane %v601_v14, %v2399_v15  ;;  %v2191_v25 = vld [vmem:[#allocation5 + $0x230] sm:$0xff]   ;;  %v2192_v26 = vld [vmem:[#allocation5 + $0x2a0] sm:$0xff]   ;;  %v2202_v41 = vld [vmem:[#allocation5 + $0x308] sm:$0xff]  }
 0x12f   :  { %1983 = vmatprep.subr.bf16.mxu1 %v2161_v29  ;;  %2001 = vmatprep.subr.bf16.mxu0 %v2162_v32  ;;  %v2194_v29 = vld [vmem:[#allocation5 + $0x2e8] sm:$0xff]   ;;  %v2195_v32 = vld [vmem:[#allocation5 + $0x238] sm:$0xff]   ;;  %v2197_v15 = vld [vmem:[#allocation5 + $0x2f0] sm:$0xff]   ;;  %v660_v50 = vmul.bf16 1009007652, %v2464_v40 }
 0x130   :  { %v643_v27 = vadd.bf16 %v606_v24, %v457_v3 }
 0x131   :  { %v673_v48 = vmax.bf16 %v660_v50, %v2464_v40 }
 0x132   :  { %1984 = vmatpush3.bf16.msra.mxu1 %v2163_v42  ;;  %2002 = vmatpush3.bf16.msra.mxu0 %v2164_v43  ;;  %v656_v0 = vmul.bf16 1009007652, %v643_v27  ;;  %v671_v42 = vmax.bf16 %v658_v38, %v2439_v31  ;;  %v2203_v43 = vld [vmem:[#allocation5 + $0x310] sm:$0xff]  }
 0x133   :  { %2003 = vmatprep.subr.bf16.mxu0 %v2165_v45  ;;  %2013 = vmatprep.subr.bf16.mxu1 %v2166_v46  ;;  %v2205_v45 = vld [vmem:[#allocation5 + $0x320] sm:$0xff]   ;;  %v2206_v46 = vld [vmem:[#allocation5 + $0x328] sm:$0xff]   ;;  %v2207_v31 = vld [vmem:[#allocation5 + $0x330] sm:$0xff]  }
 0x134   :  { %v669_v36 = vmax.bf16 %v656_v0, %v643_v27 }
 0x135   :  { %1626 = vmatmul.mubr.bf16.vlgmr.msra.gmra.mrb[12].mxu1 %v665_v54 }
 0x136   :  { %2004 = vmatpush3.bf16.msra.mxu0 %v2167_v52  ;;  %2014 = vmatpush3.bf16.msra.mxu1 %v2168_v53 }
 0x137   :  { %2005 = vmatprep.subr.bf16.mxu0 %v2169_v55  ;;  %2015 = vmatprep.subr.bf16.mxu1 %v2170_v56  ;;  %v1818_v56 = vld [vmem:[%s2507_s4] ss:$0 sm:$0xff]  ;;  %s2290_s4 = smov [#allocation7]  }
 0x138   :  { %1705 = vmatprep.mubr.bf16.mxu1 %v670_v57  ;;  %s1800_s23 = sshll.u32 %s2290_s4, 4  ;;  %s1801_s23 = int_to_ptr.vmem [resolvable:$true] %s1800_s23 }
 0x139   :  { %s2253_s24 = scalar_lea.vmem %s1801_s23, 128  ;;  %p2258_p3 = scmp.lt.s32.totalorder %s1801_s23, %s1801_s23 }
 0x13a   :  { %2006 = vmatpush3.bf16.msra.mxu0 %v2171_v17  ;;  %2016 = vmatpush3.bf16.msra.mxu1 %v2172_v22  ;;  %p2254_p2 = scmp.ne.s32.totalorder %s1801_s23, %s2253_s24  ;;  %p2259_p4 = scmp.lt.s32.totalorder %s2253_s24, %s2253_s24 }
 0x13b   :  { %2017 = vmatprep.subr.bf16.mxu1 %v2173_v60  ;;  %2035 = vmatprep.subr.bf16.mxu0 %v2174_v61 }
 0x13c   :  { %p2260_p5 = por %p2259_p4, %p2258_p3 }
 0x13d   :  { %1666 = vmatmul.mubr.bf16.vlgmr.msra.gmra.mrb[24].mxu0 %v667_v63 }
 0x13e   :  { %2018 = vmatpush3.bf16.msra.mxu1 %v2175_v1  ;;  %2036 = vmatpush3.bf16.msra.mxu0 %v2176_v2  ;;  %p2261_p6 = pnand %p2260_p5, %p2254_p2 }
 0x13f   :  { %2019 = vmatprep.subr.bf16.mxu1 %v2177_v4  ;;  %2037 = vmatprep.subr.bf16.mxu0 %v2178_v5 }
 0x140   :  { %1745 = vmatprep.mubr.bf16.mxu0 %v672_v7 }
 0x142   :  { %2020 = vmatpush3.bf16.msra.mxu1 %v2179_v16  ;;  %2038 = vmatpush3.bf16.msra.mxu0 %v2180_v8 }
 0x143   :  { %2021 = vmatprep.subr.bf16.mxu1 %v2181_v9  ;;  %2039 = vmatprep.subr.bf16.mxu0 %v2182_v10 }
 0x146   :  { %2022 = vmatpush3.bf16.msra.mxu1 %v2183_v12  ;;  %2040 = vmatpush3.bf16.msra.mxu0 %v2184_v13 }
 0x147   :  { %2023 = vmatprep.subr.bf16.mxu1 %v2185_v30  ;;  %2041 = vmatprep.subr.bf16.mxu0 %v2186_v18 }
 0x14a   :  { %2024 = vmatpush3.bf16.msra.mxu1 %v2187_v19  ;;  %2042 = vmatpush3.bf16.msra.mxu0 %v2188_v20 }
 0x14b   :  { %2025 = vmatprep.subr.bf16.mxu1 %v2189_v21  ;;  %2043 = vmatprep.subr.bf16.mxu0 %v2190_v23 }
 0x14e   :  { %2026 = vmatpush3.bf16.msra.mxu1 %v2191_v25  ;;  %2044 = vmatpush3.bf16.msra.mxu0 %v2192_v26 }
 0x14f   :  { %2027 = vmatprep.subr.bf16.mxu1 %v2193_v28  ;;  %2045 = vmatprep.subr.bf16.mxu0 %v2194_v29 }
 0x152   :  { %2028 = vmatpush3.bf16.msra.mxu1 %v2195_v32  ;;  %2046 = vmatpush3.bf16.msra.mxu0 %v2196_v33 }
 0x153   :  { %2047 = vmatprep.subr.bf16.mxu0 %v2197_v15  ;;  %2072 = vmatprep.subr.bf16.mxu1 %v2288_v49 }
 0x155   :  { %1706 = vmatmul.mubr.bf16.vlgmr.msra.gmra.mrb[16].mxu1 %v669_v36 }
 0x156   :  { %2048 = vmatpush3.bf16.msra.mxu0 %v2198_v34  ;;  %2073 = vmatpush3.bf16.msra.mxu1 %v2199_v35 }
 0x157   :  { %2049 = vmatprep.subr.bf16.mxu0 %v2200_v37  ;;  %2074 = vmatprep.subr.bf16.mxu1 %v2288_v49 }
 0x158   :  { %2088 = vmatprep.mubr.msk.bf16.mxu1 %vm2289_vm3, %v2288_v49 }
 0x15a   :  { %2050 = vmatpush3.bf16.msra.mxu0 %v2201_v39  ;;  %2075 = vmatpush3.bf16.msra.mxu1 %v2202_v41 }
 0x15b   :  { %2076 = vmatprep.subr.bf16.mxu1 %v2288_v49 }
 0x15d   :  { %1746 = vmatmul.mubr.bf16.vlgmr.msra.gmra.mrb[28].mxu0 %v671_v42 }
 0x15e   :  { %2077 = vmatpush3.bf16.msra.mxu1 %v2203_v43 }
 0x15f   :  { %2078 = vmatprep.subr.bf16.mxu1 %v2288_v49 }
 0x162   :  { %2079 = vmatpush3.bf16.msra.mxu1 %v2204_v44 }
 0x163   :  { %2080 = vmatprep.subr.bf16.mxu1 %v2288_v49 }
 0x166   :  { %2081 = vmatpush3.bf16.msra.mxu1 %v2205_v45 }
 0x167   :  { %2082 = vmatprep.subr.bf16.mxu1 %v2288_v49 }
 0x16a   :  { %2083 = vmatpush3.bf16.msra.mxu1 %v2206_v46 }
 0x16b   :  { %2084 = vmatprep.subr.bf16.mxu1 %v2288_v49 }
 0x16e   :  { %2085 = vmatpush3.bf16.msra.mxu1 %v2207_v31 }
 0x16f   :  { %2086 = vmatprep.subr.bf16.mxu1 %v2288_v49 }
 0x172   :  { %2087 = vmatpush3.bf16.msra.mxu1 %v2208_v47 }
 0x175   :  { %2089 = vmatmul.mubr.bf16.vlgmr.msra.gmra.mrb[20].mxu1 %v673_v48 }
 0x1e8   :  { %v1941_v51 = vpop.f32.mrb[8].mxu1 }
 0x1e9   :  { %v1942_v52 = vpop.f32.mrb[9].mxu1 }
 0x1ea   :  { %v1943_v53 = vadd.f32 %v1942_v52, %v1941_v51  ;;  %v1944_v54 = vpop.f32.mrb[10].mxu1 }
 0x1eb   :  { %v1945_v55 = vpop.f32.mrb[11].mxu1 }
 0x1ec   :  { %v1548_v59 = vadd.f32 %v1943_v53, %v1818_v56 }
 0x1f0   :  { %v1963_v57 = vpop.f32.mrb[20].mxu0 }
 0x1f1   :  { %v1964_v58 = vpop.f32.mrb[21].mxu0 }
 0x1f2   :  { %v1965_v17 = vadd.f32 %v1964_v58, %v1963_v57  ;;  %v1966_v22 = vpop.f32.mrb[22].mxu0 }
 0x1f3   :  { %v1967_v60 = vpop.f32.mrb[23].mxu0 }
 0x1f4   :  { %v1588_v49 = vadd.f32 %v1965_v17, %v1548_v59 }
 0x208   :  { %v1985_v61 = vpop.f32.mrb[12].mxu1 }
 0x209   :  { %v1986_v62 = vpop.f32.mrb[13].mxu1 }
 0x20a   :  { %v1987_v40 = vadd.f32 %v1986_v62, %v1985_v61  ;;  %v1988_v63 = vpop.f32.mrb[14].mxu1 }
 0x20b   :  { %v1989_v1 = vpop.f32.mrb[15].mxu1 }
 0x20c   :  { %v1628_v2 = vadd.f32 %v1987_v40, %v1588_v49 }
 0x210   :  { %v2007_v4 = vpop.f32.mrb[24].mxu0 }
 0x211   :  { %v2008_v5 = vpop.f32.mrb[25].mxu0 }
 0x212   :  { %v2009_v6 = vadd.f32 %v2008_v5, %v2007_v4  ;;  %v2010_v7 = vpop.f32.mrb[26].mxu0 }
 0x213   :  { %v2011_v16 = vpop.f32.mrb[27].mxu0 }
 0x214   :  { %v1668_v8 = vadd.f32 %v2009_v6, %v1628_v2 }
 0x228   :  { %v2029_v9 = vpop.f32.mrb[16].mxu1 }
 0x229   :  { %v2030_v10 = vpop.f32.mrb[17].mxu1 }
 0x22a   :  { %v2031_v11 = vadd.f32 %v2030_v10, %v2029_v9  ;;  %v2032_v12 = vpop.f32.mrb[18].mxu1 }
 0x22b   :  { %v2033_v13 = vpop.f32.mrb[19].mxu1 }
 0x22c   :  { %v1708_v14 = vadd.f32 %v2031_v11, %v1668_v8 }
 0x230   :  { %v2051_v30 = vpop.f32.mrb[28].mxu0 }
 0x231   :  { %v2052_v18 = vpop.f32.mrb[29].mxu0 }
 0x232   :  { %v2053_v19 = vadd.f32 %v2052_v18, %v2051_v30  ;;  %v2054_v20 = vpop.f32.mrb[30].mxu0 }
 0x233   :  { %v2055_v3 = vpop.f32.mrb[31].mxu0 }
 0x234   :  { %v1748_v24 = vadd.f32 %v2053_v19, %v1708_v14 }
 0x248   :  { %v1787_v21 = vpop.f32.mrb[20].mxu1 }
 0x249   :  { %v1788_v23 = vadd.f32 %v1787_v21, %v1748_v24  ;;  %v2090_v25 = vpop.f32.mrb[21].mxu1 }
 0x24a   :  { %v1790_v26 = vpop.f32.mrb[22].mxu1 }
 0x24b   :  { %1793 = vst [vmem:[#allocation7] sm:$0xff] %v1788_v23  ;;  %v2091_v27 = vpop.f32.mrb[23].mxu1 }
 0x24c   :  { %2264 = shalt.err (!%p2261_p6)
}
 0x24d   :  { %s2265_s27 = scalar_lea.hbm %s2508_s5, 128 }
 0x24e   :  { %p2266_p7 = scmp.ne.s32.totalorder %s2508_s5, %s2265_s27  ;;  %p2269_p8 = scmp.lt.u32.totalorder %s2265_s27, %s2508_s5 }
 0x250   :  { %p2271_p9 = pnand %p2269_p8, %p2266_p7 }
 0x252   :  { %2274 = shalt.err (!%p2271_p9)
}
 0x253   :  { %1803 = dma.vmem_to_hbm [thread:$0]  %s1801_s23, 128, %s2508_s5, [#allocation4]  }
 0x254   :  { %2279 = dma.done.wait [#allocation4], 128  }
 0x255   :  { %2280 = vsyncadd [#allocation4], 4294967168 }
 0x256   :  { %1807 = vsyncpa [#allocation3], 1 }
 0x257   :  { %1808 = vsyncpa [#allocation6], 1 }
 0x258   :  { %1809 = vsyncpa [#allocation4], 1 }

</bundles_post_ra>
